<compile_context>
chip_gen: v7x
topology: tpu7x:2x2x1
jax: 0.10.0
libtpu: 0.0.40
codegen_flags: <defaults>
</compile_context>

<pallas_src>
import math

import jax
import jax.numpy as jnp
from jax.experimental import pallas as pl
from jax.experimental.pallas import tpu as pltpu

_LOG_2PI = math.log(2.0 * math.pi)
_LANES = 128           # vreg lane width
_SUBLANE = 32          # tile-row granularity (covers f32/bf16/int8 packing)
_MIN_TILE_ROWS = 2048  # keep ~0.35us per-step overhead well below tile DMA time
_TARGET_GRID_STEPS = 4 # enough steps for v7x's 2 TensorCores to share the grid


def _round_up(x, m):
    return ((x + m - 1) // m) * m


def _vmem_budgets():
    """(vmem_limit_bytes, double-buffered tile budget), generation aware."""
    vmem_bytes = None
    try:
        info = pltpu.get_tpu_info()
        for attr in ("vmem_capacity_bytes", "vmem_size_bytes"):
            vmem_bytes = getattr(info, attr, None)
            if vmem_bytes:
                break
    except Exception:
        vmem_bytes = None
    if not vmem_bytes:
        vmem_bytes = 64 * 1024 * 1024  # conservative (v7x per-core VMEM)
    vmem_bytes = int(vmem_bytes)
    limit = min(int(vmem_bytes * 0.75), vmem_bytes - 8 * 1024 * 1024)
    limit = max(limit, 32 * 1024 * 1024)
    return limit, limit // 2


_VMEM_LIMIT_BYTES, _VMEM_TILE_BUDGET = _vmem_budgets()


def _lane_padded_row_bytes(width, itemsize):
    """VMEM bytes one block row of `width` elements really occupies."""
    return _round_up(max(int(width), 1), _LANES) * int(itemsize)


def _pick_tile_rows(n_rows, row_bytes):
    """Largest sample-axis tile fitting the double-buffered VMEM budget, but
    aiming for >= _TARGET_GRID_STEPS grid steps while keeping tiles >=
    _MIN_TILE_ROWS.  Returns n_rows (single full-extent block) when tiling is
    pointless."""
    fit = _VMEM_TILE_BUDGET // (2 * max(int(row_bytes), 1))
    fit = max(_SUBLANE, (fit // _SUBLANE) * _SUBLANE)
    want = max(_MIN_TILE_ROWS,
               _round_up(pl.cdiv(n_rows, _TARGET_GRID_STEPS), _SUBLANE))
    tile = min(fit, want)
    if tile >= n_rows:
        return n_rows
    return tile


def _compiler_params():
    return pltpu.CompilerParams(
        dimension_semantics=("parallel",),
        vmem_limit_bytes=_VMEM_LIMIT_BYTES)


# ---------------------------------------------------------------------------
# Kernels
# ---------------------------------------------------------------------------
def _log_prob_kernel(x_ref, mu_ref, log_std_ref, out_ref):
    """Diagonal-Gaussian logpdf, reduced over the component (lane) axis."""
    x = x_ref[...].astype(jnp.float32)            # (T, D); cast hidden under DMA
    log_std = log_std_ref[...]                    # (1, D)
    z = (x - mu_ref[...]) * jnp.exp(-log_std)     # EUP exp once per tile
    const = jnp.sum(2.0 * log_std + _LOG_2PI, axis=-1, keepdims=True)  # (1, 1)
    out_ref[...] = -0.5 * (jnp.sum(z * z, axis=-1, keepdims=True) + const)


def _make_folded_log_prob_kernel(fold):
    """log_prob on a lane-folded x view: each row carries `fold` samples
    (fold * D == 128), so loads are fully lane-dense and stores drop by fold x.
    The per-sample reduction is a (T,128)x(128,128) matmul against a 0/1
    group-sum matrix on the otherwise-idle MXU (HIGHEST precision => exact)."""
    inv_fold = 1.0 / float(fold)

    def kernel(x_ref, mu_ref, log_std_ref, g_ref, out_ref):
        x = x_ref[...].astype(jnp.float32)        # (T, 128)
        log_std = log_std_ref[...]                # (1, 128)  (D params tiled)
        z = (x - mu_ref[...]) * jnp.exp(-log_std)
        ssq = jnp.dot(z * z, g_ref[...],
                      preferred_element_type=jnp.float32,
                      precision=jax.lax.Precision.HIGHEST)   # (T, 128)
        const = jnp.sum(2.0 * log_std + _LOG_2PI, axis=-1,
                        keepdims=True) * inv_fold            # (1, 1)
        res = -0.5 * (ssq + const)
        out_ref[...] = res[:, : out_ref.shape[-1]]           # (T, fold)

    return kernel


def _score_terms(x_ref, mu_ref, log_std_ref):
    """d/d mu = (x-mu)/sigma^2 ; d/d log_std = ((x-mu)/sigma)^2 - 1."""
    x = x_ref[...].astype(jnp.float32)
    diff = x - mu_ref[...]
    d_mu = diff * jnp.exp(-2.0 * log_std_ref[...])
    d_ls = diff * d_mu - 1.0
    return diff, d_mu, d_ls


def _store_score(out_ref, d_mu, d_ls):
    d = d_mu.shape[-1]
    if d % _LANES == 0:
        # Both halves are lane-aligned: two full-width stores; skip the
        # concat's extra (T, 2D) VMEM relayout.
        out_ref[:, :d] = d_mu
        out_ref[:, d:] = d_ls
    else:
        out_ref[...] = jnp.concatenate([d_mu, d_ls], axis=-1)


def _score_kernel(x_ref, mu_ref, log_std_ref, out_ref):
    _, d_mu, d_ls = _score_terms(x_ref, mu_ref, log_std_ref)
    _store_score(out_ref, d_mu, d_ls)


def _fused_kernel(x_ref, mu_ref, log_std_ref, lp_ref, sc_ref):
    """log_prob and score in one pass over x (x read from HBM once)."""
    log_std = log_std_ref[...]
    diff, d_mu, d_ls = _score_terms(x_ref, mu_ref, log_std_ref)
    const = jnp.sum(2.0 * log_std + _LOG_2PI, axis=-1, keepdims=True)
    # diff * d_mu == z^2; reuse it for the log-prob reduction
    lp_ref[...] = -0.5 * (jnp.sum(diff * d_mu, axis=-1, keepdims=True) + const)
    _store_score(sc_ref, d_mu, d_ls)


# ---------------------------------------------------------------------------
# jitted wrappers (shapes static at trace time; reshapes/tiles fuse or bitcast)
# ---------------------------------------------------------------------------
def _param_rows(mean, log_std, d, fold=1):
    mu = mean.reshape(1, d).astype(jnp.float32)
    ls = log_std.reshape(1, d).astype(jnp.float32)
    if fold > 1:
        mu = jnp.tile(mu, (1, fold))
        ls = jnp.tile(ls, (1, fold))
    return mu, ls


def _log_prob_folded(x, mean, log_std, fold):
    n, d = x.shape
    nf = n // fold
    xf = x.reshape(nf, fold * d)                 # free row-major reshape
    mu, ls = _param_rows(mean, log_std, d, fold)
    # 0/1 group-sum matrix: column j sums the D lanes of sample j in each row.
    rows = jnp.arange(fold * d)[:, None] // d
    cols = jnp.arange(_LANES)[None, :]
    g = (rows == cols).astype(jnp.float32)       # (128, 128)

    row_bytes = (_lane_padded_row_bytes(fold * d, x.dtype.itemsize)
                 + _lane_padded_row_bytes(fold, 4))
    tile = _pick_tile_rows(nf, row_bytes)
    grid = (pl.cdiv(nf, tile),)

    out = pl.pallas_call(
        _make_folded_log_prob_kernel(fold),
        out_shape=jax.ShapeDtypeStruct((nf, fold), jnp.float32),
        grid=grid,
        in_specs=[pl.BlockSpec((tile, fold * d), lambda i: (i, 0)),
                  pl.BlockSpec((1, fold * d), lambda i: (0, 0)),
                  pl.BlockSpec((1, fold * d), lambda i: (0, 0)),
                  pl.BlockSpec((fold * d, _LANES), lambda i: (0, 0))],
        out_specs=pl.BlockSpec((tile, fold), lambda i: (i, 0)),
        compiler_params=_compiler_params(),
        cost_estimate=pl.CostEstimate(
            flops=4 * n * d + 2 * nf * fold * d * _LANES,
            transcendentals=fold * d * grid[0],
            bytes_accessed=x.size * x.dtype.itemsize + n * 4 + 8 * fold * d),
    )(xf, mu, ls, g)
    return out.reshape(n)                        # row-major => original order


@jax.jit
def _log_prob_impl(x, mean, log_std):
    n, d = x.shape
    fold = _LANES // d if (d < _LANES and _LANES % d == 0) else 1
    if fold > 1 and n % fold == 0:
        return _log_prob_folded(x, mean, log_std, fold)

    mu, ls = _param_rows(mean, log_std, d)
    row_bytes = (_lane_padded_row_bytes(d, x.dtype.itemsize)
                 + _lane_padded_row_bytes(1, 4))
    tile = _pick_tile_rows(n, row_bytes)
    grid = (pl.cdiv(n, tile),)

    out = pl.pallas_call(
        _log_prob_kernel,
        out_shape=jax.ShapeDtypeStruct((n, 1), jnp.float32),
        grid=grid,
        in_specs=[pl.BlockSpec((tile, d), lambda i: (i, 0)),
                  pl.BlockSpec((1, d), lambda i: (0, 0)),
                  pl.BlockSpec((1, d), lambda i: (0, 0))],
        out_specs=pl.BlockSpec((tile, 1), lambda i: (i, 0)),
        compiler_params=_compiler_params(),
        cost_estimate=pl.CostEstimate(
            flops=4 * n * d,
            transcendentals=d * grid[0],
            bytes_accessed=x.size * x.dtype.itemsize + n * 4 + 8 * d),
    )(x, mu, ls)
    return out[:, 0]


@jax.jit
def _score_impl(x, mean, log_std):
    n, d = x.shape
    mu, ls = _param_rows(mean, log_std, d)
    row_bytes = (_lane_padded_row_bytes(d, x.dtype.itemsize)
                 + _lane_padded_row_bytes(2 * d, 4))
    tile = _pick_tile_rows(n, row_bytes)
    grid = (pl.cdiv(n, tile),)

    return pl.pallas_call(
        _score_kernel,
        out_shape=jax.ShapeDtypeStruct((n, 2 * d), jnp.float32),
        grid=grid,
        in_specs=[pl.BlockSpec((tile, d), lambda i: (i, 0)),
                  pl.BlockSpec((1, d), lambda i: (0, 0)),
                  pl.BlockSpec((1, d), lambda i: (0, 0))],
        out_specs=pl.BlockSpec((tile, 2 * d), lambda i: (i, 0)),
        compiler_params=_compiler_params(),
        cost_estimate=pl.CostEstimate(
            flops=5 * n * d,
            transcendentals=d * grid[0],
            bytes_accessed=x.size * x.dtype.itemsize + n * 2 * d * 4 + 8 * d),
    )(x, mu, ls)


@jax.jit
def _log_prob_and_score_impl(x, mean, log_std):
    n, d = x.shape
    mu, ls = _param_rows(mean, log_std, d)
    row_bytes = (_lane_padded_row_bytes(d, x.dtype.itemsize)
                 + _lane_padded_row_bytes(1, 4)
                 + _lane_padded_row_bytes(2 * d, 4))
    tile = _pick_tile_rows(n, row_bytes)
    grid = (pl.cdiv(n, tile),)

    lp, sc = pl.pallas_call(
        _fused_kernel,
        out_shape=(jax.ShapeDtypeStruct((n, 1), jnp.float32),
                   jax.ShapeDtypeStruct((n, 2 * d), jnp.float32)),
        grid=grid,
        in_specs=[pl.BlockSpec((tile, d), lambda i: (i, 0)),
                  pl.BlockSpec((1, d), lambda i: (0, 0)),
                  pl.BlockSpec((1, d), lambda i: (0, 0))],
        out_specs=(pl.BlockSpec((tile, 1), lambda i: (i, 0)),
                   pl.BlockSpec((tile, 2 * d), lambda i: (i, 0))),
        compiler_params=_compiler_params(),
        cost_estimate=pl.CostEstimate(
            flops=7 * n * d,
            transcendentals=d * grid[0],
            bytes_accessed=x.size * x.dtype.itemsize + n * (2 * d + 1) * 4 + 8 * d),
    )(x, mu, ls)
    return lp[:, 0], sc


# ---------------------------------------------------------------------------
# Wrapper: the "module"
# ---------------------------------------------------------------------------
class DiagonalGaussianMultivariate:
    """Concrete BaseMultivariate with Pallas-backed log_prob / score."""

    def __init__(self, n_comp: int, key):
        k_mu, k_ls = jax.random.split(key)
        self.mean = jax.random.normal(k_mu, (n_comp,), dtype=jnp.float32)
        self.log_std = 0.1 * jax.random.normal(k_ls, (n_comp,), dtype=jnp.float32)
        self.n_comp = n_comp

    def forward(self, *args):
        # Mirrors the base-class semantics exactly.
        raise RuntimeError(
            "forward method is not implemented for a BaseMultivariate object.")

    def sample(self, sample_shape=()):
        # TODO(synk): base class leaves sample() NotImplemented; not a kernel path.
        raise NotImplementedError("You must implement a sample method.")

    def log_prob(self, x):
        return _log_prob_impl(x, self.mean, self.log_std)

    def score(self, x):
        # TODO(synk): generic autograd-Jacobian over arbitrary submodule params
        # has no Pallas equivalent; the diagonal-Gaussian Jacobian is computed
        # analytically (identical values to autograd), params in registration
        # order: [d/d mean, d/d log_std].
        return _score_impl(x, self.mean, self.log_std)

    def log_prob_and_score(self, x):
        return _log_prob_and_score_impl(x, self.mean, self.log_std)


# ---------------------------------------------------------------------------
# Pure-JAX references (for correctness check)
# ---------------------------------------------------------------------------
def _log_prob_ref(x, mean, log_std):
    z = (x - mean) / jnp.exp(log_std)
    return -0.5 * jnp.sum(z * z + 2.0 * log_std + _LOG_2PI, axis=-1)


def _score_ref(x, mean, log_std):
    diff = x - mean
    inv_var = jnp.exp(-2.0 * log_std)
    d_mu = diff * inv_var
    d_ls = diff * diff * inv_var - 1.0
    return jnp.concatenate([d_mu, d_ls], axis=-1)


if __name__ == "__main__":
    key = jax.random.PRNGKey(0)
    k_param, k1, k2, k3, k4 = jax.random.split(key, 5)

    n_comp = 32
    dist = DiagonalGaussianMultivariate(n_comp, k_param)

    def check_lp(x):
        lp = jax.block_until_ready(dist.log_prob(x))
        assert lp.shape == (x.shape[0],)
        assert jnp.allclose(lp, _log_prob_ref(x, dist.mean, dist.log_std),
                            atol=1e-4, rtol=1e-5)

    def check_sc(sc, x):
        assert sc.shape == (x.shape[0], 2 * n_comp)
        assert jnp.allclose(sc, _score_ref(x, dist.mean, dist.log_std),
                            atol=1e-5, rtol=1e-5)

    # 1) Small primary case: folded log_prob path (128 % 32 == 0, 8 % 4 == 0).
    x = jax.random.normal(k1, (8, n_comp), dtype=jnp.float32)
    check_lp(x)
    check_sc(jax.block_until_ready(dist.score(x)), x)
    lp_f, sc_f = jax.block_until_ready(dist.log_prob_and_score(x))
    assert jnp.allclose(lp_f, _log_prob_ref(x, dist.mean, dist.log_std),
                        atol=1e-4, rtol=1e-5)
    check_sc(sc_f, x)

    # 2) Odd N: exercises the plain (non-folded) log_prob fallback.
    x2 = jax.random.normal(k2, (13, n_comp), dtype=jnp.float32)
    check_lp(x2)
    check_sc(jax.block_until_ready(dist.score(x2)), x2)

    # 3) Multi-tile + ragged trailing block, folded log_prob and fused paths.
    x3 = jax.random.normal(k3, (8200, n_comp), dtype=jnp.float32)
    check_lp(x3)
    lp3, sc3 = jax.block_until_ready(dist.log_prob_and_score(x3))
    assert jnp.allclose(lp3, _log_prob_ref(x3, dist.mean, dist.log_std),
                        atol=1e-4, rtol=1e-5)
    check_sc(sc3, x3)

    # 4) Multi-tile + ragged trailing block on the plain log_prob path.
    x4 = jax.random.normal(k4, (4102, n_comp), dtype=jnp.float32)
    check_lp(x4)

    # forward() must raise, mirroring the base class.
    try:
        dist.forward(x)
        raise AssertionError("forward should have raised RuntimeError")
    except RuntimeError:
        pass

    print("KERNEL_OK")
</pallas_src>

<mosaic_0001>
module attributes {stable_mosaic.version = 11 : i64} {
  func.func @kernel(%arg0: i32, %arg1: memref<2x128xf32, #tpu.memory_space<vmem>>, %arg2: memref<1x128xf32, #tpu.memory_space<vmem>>, %arg3: memref<1x128xf32, #tpu.memory_space<vmem>>, %arg4: memref<128x128xf32, #tpu.memory_space<vmem>>, %arg5: memref<2x4xf32, #tpu.memory_space<vmem>>) attributes {dimension_semantics = [#tpu.dimension_semantics<parallel>], iteration_bounds = array<i64: 1>, scalar_prefetch = 0 : i64, scratch_operands = 0 : i64, tpu.core_type = #tpu.core_type<tc>, window_params = [{transform_indices = @transform_0, window_bounds = array<i64: 2, 128>}, {pipeline_mode = #tpu.pipeline_mode<synchronous>, transform_indices = @transform_1, window_bounds = array<i64: 1, 128>}, {pipeline_mode = #tpu.pipeline_mode<synchronous>, transform_indices = @transform_2, window_bounds = array<i64: 1, 128>}, {pipeline_mode = #tpu.pipeline_mode<synchronous>, transform_indices = @transform_3, window_bounds = array<i64: 128, 128>}, {transform_indices = @transform_4, window_bounds = array<i64: 2, 4>}]} {
    %c0 = arith.constant 0 : index
    %c0_0 = arith.constant 0 : index
    %0 = vector.load %arg1[%c0, %c0_0] : memref<2x128xf32, #tpu.memory_space<vmem>>, vector<2x128xf32>
    %c0_1 = arith.constant 0 : index
    %c0_2 = arith.constant 0 : index
    %1 = vector.load %arg3[%c0_1, %c0_2] : memref<1x128xf32, #tpu.memory_space<vmem>>, vector<1x128xf32>
    %c0_3 = arith.constant 0 : index
    %c0_4 = arith.constant 0 : index
    %2 = vector.load %arg2[%c0_3, %c0_4] : memref<1x128xf32, #tpu.memory_space<vmem>>, vector<1x128xf32>
    %3 = vector.broadcast %2 : vector<1x128xf32> to vector<2x128xf32>
    %4 = arith.subf %0, %3 : vector<2x128xf32>
    %cst = arith.constant 0.000000e+00 : f32
    %5 = vector.broadcast %cst : f32 to vector<1x128xf32>
    %6 = arith.subf %5, %1 : vector<1x128xf32>
    %7 = math.exp %6 : vector<1x128xf32>
    %8 = vector.broadcast %7 : vector<1x128xf32> to vector<2x128xf32>
    %9 = arith.mulf %4, %8 : vector<2x128xf32>
    %10 = arith.mulf %9, %9 : vector<2x128xf32>
    %c0_5 = arith.constant 0 : index
    %c0_6 = arith.constant 0 : index
    %11 = vector.load %arg4[%c0_5, %c0_6] : memref<128x128xf32, #tpu.memory_space<vmem>>, vector<128x128xf32>
    %cst_7 = arith.constant dense<0.000000e+00> : vector<2x128xf32>
    %12 = tpu.matmul %10, %11, %cst_7 {dimension_numbers = #tpu.dot_dimension_numbers<[1], [0], [0], [1], [0, 0, 1, 1], [], []>, precision = #tpu.contract_precision<fp32>} : vector<2x128xf32>, vector<128x128xf32>, vector<2x128xf32> -> vector<2x128xf32>
    %cst_8 = arith.constant 2.000000e+00 : f32
    %13 = vector.broadcast %cst_8 : f32 to vector<1x128xf32>
    %14 = arith.mulf %13, %1 : vector<1x128xf32>
    %cst_9 = arith.constant 1.83787704 : f32
    %15 = vector.broadcast %cst_9 : f32 to vector<1x128xf32>
    %16 = arith.addf %14, %15 : vector<1x128xf32>
    %cst_10 = arith.constant dense<0.000000e+00> : vector<1xf32>
    %17 = vector.multi_reduction <add>, %16, %cst_10 [1] : vector<1x128xf32> to vector<1xf32>
    %18 = vector.shape_cast %17 : vector<1xf32> to vector<1x1xf32>
    %cst_11 = arith.constant 2.500000e-01 : f32
    %19 = vector.broadcast %cst_11 : f32 to vector<1x1xf32>
    %20 = arith.mulf %18, %19 : vector<1x1xf32>
    %21 = vector.broadcast %20 : vector<1x1xf32> to vector<2x128xf32>
    %22 = arith.addf %12, %21 : vector<2x128xf32>
    %cst_12 = arith.constant -5.000000e-01 : f32
    %23 = vector.broadcast %cst_12 : f32 to vector<2x128xf32>
    %24 = arith.mulf %23, %22 : vector<2x128xf32>
    %25 = vector.extract_strided_slice %24 {offsets = [0, 0], sizes = [2, 4], strides = [1, 1]} : vector<2x128xf32> to vector<2x4xf32>
    %c0_13 = arith.constant 0 : index
    %c0_14 = arith.constant 0 : index
    %26 = vector.load %arg5[%c0_13, %c0_14] : memref<2x4xf32, #tpu.memory_space<vmem>>, vector<2x4xf32>
    tpu.vector_store %arg5[%c0_13, %c0_14], %25 {strides = array<i32>} : memref<2x4xf32, #tpu.memory_space<vmem>>, vector<2x4xf32>,
    return
  }
  func.func @transform_0(%arg0: i32) -> (i32, i32) {
    %c0_i32 = arith.constant 0 : i32
    %c0_i32_0 = arith.constant 0 : i32
    return %arg0, %c0_i32 : i32, i32
  }
  func.func @transform_1(%arg0: i32) -> (i32, i32) {
    %c0_i32 = arith.constant 0 : i32
    %c0_i32_0 = arith.constant 0 : i32
    %c0_i32_1 = arith.constant 0 : i32
    return %c0_i32, %c0_i32_0 : i32, i32
  }
  func.func @transform_2(%arg0: i32) -> (i32, i32) {
    %c0_i32 = arith.constant 0 : i32
    %c0_i32_0 = arith.constant 0 : i32
    %c0_i32_1 = arith.constant 0 : i32
    return %c0_i32, %c0_i32_0 : i32, i32
  }
  func.func @transform_3(%arg0: i32) -> (i32, i32) {
    %c0_i32 = arith.constant 0 : i32
    %c0_i32_0 = arith.constant 0 : i32
    %c0_i32_1 = arith.constant 0 : i32
    return %c0_i32, %c0_i32_0 : i32, i32
  }
  func.func @transform_4(%arg0: i32) -> (i32, i32) {
    %c0_i32 = arith.constant 0 : i32
    %c0_i32_0 = arith.constant 0 : i32
    return %arg0, %c0_i32 : i32, i32
  }
}

</mosaic_0001>

<bundles_post_ra>
// kernel: _log_prob_impl.1
= control target key start
LH: loop header
LB: loop body
LE: loop exit
PB: predicated region body
PF: predicated region fallthrough
CT: control target
= control target key end

     0   :  { %v1185_v0 = vmov 0.0|0.0   ;;  %vm1186_vm0 = vmmov 0   ;;  %v1187_v8 = vmov 0.0   ;;  %v31_v29 = vlaneseq  ;;  %s1596_s3 = inlined_call_operand.vmem [shape: f32[128,128], index: 3, kind: input, shape index: {}]   ;;  %s1597_s2 = inlined_call_operand.vmem [shape: f32[1,128], index: 2, kind: input, shape index: {}]   ;;  %s1598_s0 = inlined_call_operand.vmem [shape: f32[2,128], index: 0, kind: input, shape index: {}]   ;;  %s1599_s1 = inlined_call_operand.vmem [shape: f32[1,128], index: 1, kind: input, shape index: {}]   ;;  %s1600_s4 = inlined_call_operand.vmem [shape: f32[2,4], index: 4, kind: output, shape index: {}]  }
   0x1   :  { %1026 = vmatprep.subr.bf16.mxu1 %v1185_v0  ;;  %1098 = vmatprep.subr.bf16.mxu0 %v1185_v0  ;;  %v38_v1 = vld [vmem:[%s1596_s3] sm:$0xff]  ;;  %v1221_v2 = vld [vmem:[%s1596_s3 + $0x8] sm:$0xff]  ;;  %v1226_v3 = vld [vmem:[%s1596_s3 + $0x10] sm:$0xff]  ;;  %vm56_vm1 = vcmask 1040384   ;;  %vm707_vm2 = vcmask 25600  }
   0x2   :  { %v66_v4 = vand.u32 4294901760, %v38_v1  ;;  %v69_v5 = vand.u32 4294901760, %v1221_v2  ;;  %v1232_v6 = vld [vmem:[%s1596_s3 + $0x18] sm:$0xff]  ;;  %v72_v7 = vand.u32 4294901760, %v1226_v3  ;;  %848 = vmatprep.mubr.msk.f32.mxu1 %vm1186_vm0, %v1187_v8  ;;  %953 = vmatprep.mubr.msk.f32.mxu0 %vm1186_vm0, %v1187_v8  ;;  %v1243_v10 = vld [vmem:[%s1596_s3 + $0x20] sm:$0xff]  ;;  %v1248_v11 = vld [vmem:[%s1596_s3 + $0x28] sm:$0xff] }
   0x3   :  { %v75_v9 = vand.u32 4294901760, %v1232_v6  ;;  %v78_v14 = vand.u32 4294901760, %v1243_v10  ;;  %v81_v15 = vand.u32 4294901760, %v1248_v11  ;;  %v1269_v16 = vld [vmem:[%s1596_s3 + $0x30] sm:$0xff]  ;;  %v1274_v17 = vld [vmem:[%s1596_s3 + $0x38] sm:$0xff]  ;;  %v1296_v22 = vld [vmem:[%s1596_s3 + $0x40] sm:$0xff] }
   0x4   :  { %v1252_v12 = vpack.c.bf16 %v69_v5, %v66_v4  ;;  %v1279_v18 = vld [vmem:[%s1597_s2] sm:$0x1]  ;;  %v84_v20 = vand.u32 4294901760, %v1269_v16  ;;  %v87_v21 = vand.u32 4294901760, %v1274_v17  ;;  %v1301_v23 = vld [vmem:[%s1596_s3 + $0x48] sm:$0xff]  ;;  %v90_v27 = vand.u32 4294901760, %v1296_v22 }
   0x5   :  { %v1260_v13 = vpack.c.bf16 %v75_v9, %v72_v7  ;;  %v1287_v19 = vpack.c.bf16 %v81_v15, %v78_v14  ;;  %v27_v24 = vsub.f32 0.0, %v1279_v18  ;;  %v93_v28 = vand.u32 4294901760, %v1301_v23  ;;  %v1319_v30 = vld [vmem:[%s1596_s3 + $0x50] sm:$0xff]  ;;  %v1324_v31 = vld [vmem:[%s1596_s3 + $0x58] sm:$0xff]  ;;  %v1343_v36 = vld [vmem:[%s1596_s3 + $0x60] sm:$0xff] }
   0x6   :  { %1028 = vmatpush3.bf16.msra.mxu1 %v1252_v12  ;;  %1100 = vmatpush3.bf16.msra.mxu0 %v1252_v12  ;;  %v1310_v26 = vpack.c.bf16 %v87_v21, %v84_v20  ;;  %v96_v33 = vand.u32 4294901760, %v1319_v30  ;;  %v99_v34 = vand.u32 4294901760, %v1324_v31  ;;  %v1336_v35 = vshrl.u32 %v31_v29, 7  ;;  %v1348_v37 = vld [vmem:[%s1596_s3 + $0x68] sm:$0xff]  ;;  %v17_v39 = vld [vmem:[%s1598_s0] sm:$0x3] }
   0x7   :  { %1029 = vmatprep.subr.bf16.mxu1 %v1185_v0  ;;  %1101 = vmatprep.subr.bf16.mxu0 %v1185_v0  ;;  %v28_v25 = vmul.f32 1.442695, %v27_v24  ;;  %v1332_v32 = vpack.c.bf16 %v93_v28, %v90_v27  ;;  %v1350_v38 = vsub.f32 %v38_v1, %v66_v4  ;;  %v713_v40 = vld [vmem:[%s1599_s1] ss:$0 sm:$0xff]  ;;  %v102_v42 = vand.u32 4294901760, %v1343_v36  ;;  %v1371_v44 = vld [vmem:[%s1596_s3 + $0x70] sm:$0xff] }
   0x8   :  { %v1364_v41 = vpack.c.bf16 %v99_v34, %v96_v33  ;;  %v105_v43 = vand.u32 4294901760, %v1348_v37  ;;  %v33_v45 = vsub.s32 0, %v1336_v35  ;;  %v1377_v46 = vsub.f32 %v1221_v2, %v69_v5  ;;  %v1384_v47 = vld [vmem:[%s1596_s3 + $0x78] sm:$0xff] }
   0x9   :  { %1183 = vpow2.f32 %v28_v25  ;;  %v26_v48 = vsub.f32 %v17_v39, %v713_v40  ;;  %v108_v50 = vand.u32 4294901760, %v1371_v44  ;;  %v111_v52 = vand.u32 4294901760, %v1384_v47 }
   0xa   :  { %1031 = vmatpush3.bf16.msra.mxu1 %v1260_v13  ;;  %1103 = vmatpush3.bf16.msra.mxu0 %v1260_v13  ;;  %v1393_v51 = vpack.c.bf16 %v105_v43, %v102_v42  ;;  %v159_v54 = vand.u32 4294901760, %v1350_v38  ;;  %v1402_v55 = vsub.f32 %v1226_v3, %v72_v7  ;;  %v1407_v56 = vsub.f32 %v1232_v6, %v75_v9 }
   0xb   :  { %1032 = vmatprep.subr.bf16.mxu1 %v1185_v0  ;;  %1104 = vmatprep.subr.bf16.mxu0 %v1185_v0  ;;  %v166_v57 = vand.u32 4294901760, %v1377_v46  ;;  %v1415_v59 = vsub.f32 %v1243_v10, %v78_v14  ;;  %v1420_v60 = vsub.f32 %v1248_v11, %v81_v15  ;;  %v1428_v61 = vpack.c.bf16 %v111_v52, %v108_v50 }
   0xc   :  { %v160_v63 = vsub.f32 %v1350_v38, %v159_v54  ;;  %v54_v1 = vmul.f32 2.0, %v1279_v18  ;;  %v173_v3 = vand.u32 4294901760, %v1402_v55  ;;  %v180_v4 = vand.u32 4294901760, %v1407_v56 }
   0xd   :  { %v167_v2 = vsub.f32 %v1377_v46, %v166_v57  ;;  %v1442_v6 = vsub.f32 %v1269_v16, %v84_v20  ;;  %v1447_v7 = vsub.f32 %v1274_v17, %v87_v21  ;;  %v187_v9 = vand.u32 4294901760, %v1415_v59 }
   0xe   :  { %1034 = vmatpush3.bf16.msra.mxu1 %v1287_v19  ;;  %1106 = vmatpush3.bf16.msra.mxu0 %v1287_v19  ;;  %v55_v10 = vadd.f32 1.837877, %v54_v1  ;;  %v161_v14 = vand.u32 4294901760, %v160_v63  ;;  %v1123_v15 = vpack.c.bf16 %v166_v57, %v159_v54  ;;  %v194_v16 = vand.u32 4294901760, %v1420_v60 }
   0xf   :  { %1035 = vmatprep.subr.bf16.mxu1 %v1185_v0  ;;  %1107 = vmatprep.subr.bf16.mxu0 %v1185_v0  ;;  %v168_v17 = vand.u32 4294901760, %v167_v2  ;;  %v174_v18 = vsub.f32 %v1402_v55, %v173_v3  ;;  %v181_v20 = vsub.f32 %v1407_v56, %v180_v4  ;;  %v1465_v25 = vsub.f32 %v1296_v22, %v90_v27 }
  0x10   :  { %v57_v21 = vsel %vm56_vm1, %v55_v10, 0.0  ;;  %v1470_v29 = vsub.f32 %v1301_v23, %v93_v28  ;;  %v201_v39 = vand.u32 4294901760, %v1442_v6  ;;  %v208_v27 = vand.u32 4294901760, %v1447_v7 }
  0x11   :  { %58 = vadd.xlane.f32.xlu0 %v57_v21  ;;  %v1051_v54 = vpack.c.bf16 %v168_v17, %v161_v14  ;;  %v175_v57 = vand.u32 4294901760, %v174_v18  ;;  %v182_v22 = vand.u32 4294901760, %v181_v20  ;;  %v1483_v28 = vsub.f32 %v1319_v30, %v96_v33 }
  0x12   :  { %1037 = vmatpush3.bf16.msra.mxu1 %v1310_v26  ;;  %1109 = vmatpush3.bf16.msra.mxu0 %v1310_v26  ;;  %v215_v2 = vand.u32 4294901760, %v1465_v25  ;;  %v1129_v10 = vpack.c.bf16 %v194_v16, %v187_v9  ;;  %v209_v30 = vsub.f32 %v1447_v7, %v208_v27  ;;  %v1504_v33 = vsub.f32 %v1348_v37, %v105_v43 }
  0x13   :  { %1038 = vmatprep.subr.bf16.mxu1 %v1185_v0  ;;  %1110 = vmatprep.subr.bf16.mxu0 %v1185_v0  ;;  %v1184_v49 = vpop.eup %1183  ;;  %v1132_v17 = vpack.c.bf16 %v208_v27, %v201_v39  ;;  %v1517_v37 = vsub.f32 %v1371_v44, %v108_v50  ;;  %v1522_v43 = vsub.f32 %v1384_v47, %v111_v52 }
  0x14   :  { %v34_v53 = vrot.slane %v1184_v49, %v33_v45  ;;  %v188_v49 = vsub.f32 %v1415_v59, %v187_v9  ;;  %v216_v14 = vsub.f32 %v1465_v25, %v215_v2  ;;  %v250_v44 = vand.u32 4294901760, %v1504_v33 }
  0x16   :  { %1040 = vmatpush3.bf16.msra.mxu1 %v1332_v32  ;;  %1112 = vmatpush3.bf16.msra.mxu0 %v1332_v32  ;;  %v36_v58 = vmul.f32 %v34_v53, %v26_v48  ;;  %v1126_v48 = vpack.c.bf16 %v180_v4, %v173_v3  ;;  %v195_v53 = vsub.f32 %v1420_v60, %v194_v16  ;;  %v189_v63 = vand.u32 4294901760, %v188_v49 }
  0x17   :  { %1041 = vmatprep.subr.bf16.mxu1 %v1185_v0  ;;  %1113 = vmatprep.subr.bf16.mxu0 %v1185_v0  ;;  %v222_v3 = vand.u32 4294901760, %v1470_v29  ;;  %v1054_v4 = vpack.c.bf16 %v182_v22, %v175_v57  ;;  %v210_v16 = vand.u32 4294901760, %v209_v30  ;;  %v217_v18 = vand.u32 4294901760, %v216_v14 }
  0x18   :  { %v37_v62 = vmul.f32 %v36_v58, %v36_v58  ;;  %v1488_v58 = vsub.f32 %v1324_v31, %v99_v34  ;;  %v196_v1 = vand.u32 4294901760, %v195_v53  ;;  %v1499_v31 = vsub.f32 %v1343_v36, %v102_v42 }
  0x19   :  { %v229_v36 = vand.u32 4294901760, %v1483_v28  ;;  %v1135_v21 = vpack.c.bf16 %v222_v3, %v215_v2  ;;  %v257_v49 = vand.u32 4294901760, %v1517_v37  ;;  %v251_v57 = vsub.f32 %v1504_v33, %v250_v44 }
  0x1a   :  { %1043 = vmatpush3.bf16.msra.mxu1 %v1364_v41  ;;  %1115 = vmatpush3.bf16.msra.mxu0 %v1364_v41  ;;  %v1437_v5 = vand.u32 4294901760, %v37_v62  ;;  %v1057_v34 = vpack.c.bf16 %v196_v1, %v189_v63  ;;  %v236_v42 = vand.u32 4294901760, %v1488_v58  ;;  %v264_v22 = vand.u32 4294901760, %v1522_v43 }
  0x1b   :  { %1044 = vmatprep.subr.bf16.mxu1 %v1185_v0  ;;  %1116 = vmatprep.subr.bf16.mxu0 %v1185_v0  ;;  %v252_v63 = vand.u32 4294901760, %v251_v57  ;;  %v258_v1 = vsub.f32 %v1517_v37, %v257_v49  ;;  %v1078_v14 = vpack.c.bf16 %v1407_v56, %v1402_v55 }
  0x1c   :  { %v1453_v11 = vsub.f32 %v37_v62, %v1437_v5  ;;  %v202_v62 = vsub.f32 %v1442_v6, %v201_v39  ;;  %v1138_v50 = vpack.c.bf16 %v236_v42, %v229_v36  ;;  %v265_v2 = vsub.f32 %v1522_v43, %v264_v22 }
  0x1d   :  { %v1144_v30 = vpack.c.bf16 %v264_v22, %v257_v49 }
  0x1e   :  { %1046 = vmatpush3.bf16.msra.mxu1 %v1393_v51  ;;  %1118 = vmatpush3.bf16.msra.mxu0 %v1393_v51  ;;  %v148_v24 = vand.u32 4294901760, %v1453_v11  ;;  %v203_v9 = vand.u32 4294901760, %v202_v62 }
  0x1f   :  { %1047 = vmatprep.subr.bf16.mxu1 %v1185_v0  ;;  %1119 = vmatprep.subr.bf16.mxu0 %v1185_v0 }
  0x20   :  { %v149_v40 = vsub.f32 %v1453_v11, %v148_v24  ;;  %v1060_v39 = vpack.c.bf16 %v210_v16, %v203_v9  ;;  %v1075_v9 = vpack.c.bf16 %v1377_v46, %v1350_v38 }
  0x22   :  { %1049 = vmatpush3.bf16.msra.mxu1 %v1428_v61  ;;  %1121 = vmatpush3.bf16.msra.mxu0 %v1428_v61  ;;  %v150_v23 = vand.u32 4294901760, %v149_v40  ;;  %v230_v40 = vsub.f32 %v1483_v28, %v229_v36 }
  0x23   :  { %1050 = vmatprep.subr.bf16.mxu1 %v1185_v0  ;;  %1122 = vmatprep.subr.bf16.mxu0 %v1185_v0 }
  0x24   :  { %v231_v53 = vand.u32 4294901760, %v230_v40 }
  0x25   :  { %954 = vmatmul.mubr.f32.vlgmr.msra.gmra.mrb[0].mxu0 %v148_v24  ;;  %849 = vmatmul.mubr.f32.vlgmr.msra.gmra.mrb[0].mxu1 %v150_v23  ;;  %v243_v24 = vand.u32 4294901760, %v1499_v31 }
  0x26   :  { %1124 = vmatpush3.bf16.msra.mxu0 %v1123_v15  ;;  %988 = vmatprep.mubr.msk.f32.mxu0 %vm1186_vm0, %v1187_v8  ;;  %v223_v15 = vsub.f32 %v1470_v29, %v222_v3 }
  0x27   :  { %1125 = vmatprep.subr.bf16.mxu0 %v1185_v0  ;;  %1052 = vmatpush3.bf16.msra.mxu1 %v1051_v54  ;;  %v244_v52 = vsub.f32 %v1499_v31, %v243_v24  ;;  %v1141_v23 = vpack.c.bf16 %v250_v44, %v243_v24 }
  0x28   :  { %1053 = vmatprep.subr.bf16.mxu1 %v1185_v0  ;;  %883 = vmatprep.mubr.msk.f32.mxu1 %vm1186_vm0, %v1187_v8  ;;  %v224_v20 = vand.u32 4294901760, %v223_v15 }
  0x29   :  { %v245_v27 = vand.u32 4294901760, %v244_v52 }
  0x2a   :  { %1127 = vmatpush3.bf16.msra.mxu0 %v1126_v48  ;;  %v237_v48 = vsub.f32 %v1488_v58, %v236_v42  ;;  %v1063_v47 = vpack.c.bf16 %v224_v20, %v217_v18 }
  0x2b   :  { %1128 = vmatprep.subr.bf16.mxu0 %v1185_v0  ;;  %1055 = vmatpush3.bf16.msra.mxu1 %v1054_v4  ;;  %v1069_v3 = vpack.c.bf16 %v252_v63, %v245_v27  ;;  %v259_v4 = vand.u32 4294901760, %v258_v1 }
  0x2c   :  { %1056 = vmatprep.subr.bf16.mxu1 %v1185_v0  ;;  %v238_v54 = vand.u32 4294901760, %v237_v48 }
  0x2e   :  { %1130 = vmatpush3.bf16.msra.mxu0 %v1129_v10  ;;  %v1066_v62 = vpack.c.bf16 %v238_v54, %v231_v53  ;;  %v266_v10 = vand.u32 4294901760, %v265_v2 }
  0x2f   :  { %1131 = vmatprep.subr.bf16.mxu0 %v1185_v0  ;;  %1058 = vmatpush3.bf16.msra.mxu1 %v1057_v34 }
  0x30   :  { %1059 = vmatprep.subr.bf16.mxu1 %v1185_v0  ;;  %v1072_v34 = vpack.c.bf16 %v266_v10, %v259_v4 }
  0x32   :  { %1133 = vmatpush3.bf16.msra.mxu0 %v1132_v17 }
  0x33   :  { %1134 = vmatprep.subr.bf16.mxu0 %v1185_v0  ;;  %1061 = vmatpush3.bf16.msra.mxu1 %v1060_v39 }
  0x34   :  { %1062 = vmatprep.subr.bf16.mxu1 %v1185_v0 }
  0x36   :  { %1136 = vmatpush3.bf16.msra.mxu0 %v1135_v21 }
  0x37   :  { %1137 = vmatprep.subr.bf16.mxu0 %v1185_v0  ;;  %1064 = vmatpush3.bf16.msra.mxu1 %v1063_v47 }
  0x38   :  { %1065 = vmatprep.subr.bf16.mxu1 %v1185_v0 }
  0x3a   :  { %1139 = vmatpush3.bf16.msra.mxu0 %v1138_v50 }
  0x3b   :  { %1140 = vmatprep.subr.bf16.mxu0 %v1185_v0  ;;  %1067 = vmatpush3.bf16.msra.mxu1 %v1066_v62 }
  0x3c   :  { %1068 = vmatprep.subr.bf16.mxu1 %v1185_v0 }
  0x3e   :  { %1142 = vmatpush3.bf16.msra.mxu0 %v1141_v23 }
  0x3f   :  { %1143 = vmatprep.subr.bf16.mxu0 %v1185_v0  ;;  %1070 = vmatpush3.bf16.msra.mxu1 %v1069_v3 }
  0x40   :  { %1071 = vmatprep.subr.bf16.mxu1 %v1185_v0 }
  0x42   :  { %1145 = vmatpush3.bf16.msra.mxu0 %v1144_v30 }
  0x43   :  { %1146 = vmatprep.subr.bf16.mxu0 %v1185_v0  ;;  %1073 = vmatpush3.bf16.msra.mxu1 %v1072_v34 }
  0x44   :  { %1074 = vmatprep.subr.bf16.mxu1 %v1185_v0 }
  0x45   :  { %989 = vmatmul.mubr.f32.vlgmr.msra.gmra.mrb[0].mxu0 %v1437_v5 }
  0x46   :  { %1148 = vmatpush3.bf16.msra.mxu0 %v1252_v12  ;;  %1023 = vmatprep.mubr.msk.f32.mxu0 %vm1186_vm0, %v1187_v8  ;;  %v1081_v12 = vpack.c.bf16 %v1420_v60, %v1415_v59 }
  0x47   :  { %1149 = vmatprep.subr.bf16.mxu0 %v1185_v0  ;;  %884 = vmatmul.mubr.f32.vlgmr.msra.gmra.mrb[0].mxu1 %v1437_v5 }
  0x48   :  { %1076 = vmatpush3.bf16.msra.mxu1 %v1075_v9  ;;  %918 = vmatprep.mubr.msk.f32.mxu1 %vm1186_vm0, %v1187_v8  ;;  %v1087_v8 = vpack.c.bf16 %v1470_v29, %v1465_v25 }
  0x49   :  { %1077 = vmatprep.subr.bf16.mxu1 %v1185_v0 }
  0x4a   :  { %1151 = vmatpush3.bf16.msra.mxu0 %v1260_v13  ;;  %v1084_v13 = vpack.c.bf16 %v1447_v7, %v1442_v6 }
  0x4b   :  { %1152 = vmatprep.subr.bf16.mxu0 %v1185_v0 }
  0x4c   :  { %1079 = vmatpush3.bf16.msra.mxu1 %v1078_v14 }
  0x4d   :  { %1080 = vmatprep.subr.bf16.mxu1 %v1185_v0 }
  0x4e   :  { %1154 = vmatpush3.bf16.msra.mxu0 %v1287_v19  ;;  %v1090_v19 = vpack.c.bf16 %v1488_v58, %v1483_v28 }
  0x4f   :  { %1155 = vmatprep.subr.bf16.mxu0 %v1185_v0 }
  0x50   :  { %1082 = vmatpush3.bf16.msra.mxu1 %v1081_v12 }
  0x51   :  { %1083 = vmatprep.subr.bf16.mxu1 %v1185_v0 }
  0x52   :  { %1157 = vmatpush3.bf16.msra.mxu0 %v1310_v26  ;;  %v1093_v26 = vpack.c.bf16 %v1504_v33, %v1499_v31 }
  0x53   :  { %1158 = vmatprep.subr.bf16.mxu0 %v1185_v0 }
  0x54   :  { %1085 = vmatpush3.bf16.msra.mxu1 %v1084_v13 }
  0x55   :  { %1086 = vmatprep.subr.bf16.mxu1 %v1185_v0 }
  0x56   :  { %1160 = vmatpush3.bf16.msra.mxu0 %v1332_v32  ;;  %v1096_v32 = vpack.c.bf16 %v1522_v43, %v1517_v37 }
  0x57   :  { %1161 = vmatprep.subr.bf16.mxu0 %v1185_v0 }
  0x58   :  { %1088 = vmatpush3.bf16.msra.mxu1 %v1087_v8 }
  0x59   :  { %1089 = vmatprep.subr.bf16.mxu1 %v1185_v0 }
  0x5a   :  { %1163 = vmatpush3.bf16.msra.mxu0 %v1364_v41 }
  0x5b   :  { %1164 = vmatprep.subr.bf16.mxu0 %v1185_v0 }
  0x5c   :  { %1091 = vmatpush3.bf16.msra.mxu1 %v1090_v19 }
  0x5d   :  { %1092 = vmatprep.subr.bf16.mxu1 %v1185_v0 }
  0x5e   :  { %1166 = vmatpush3.bf16.msra.mxu0 %v1393_v51 }
  0x5f   :  { %1167 = vmatprep.subr.bf16.mxu0 %v1185_v0 }
  0x60   :  { %1094 = vmatpush3.bf16.msra.mxu1 %v1093_v26 }
  0x61   :  { %1095 = vmatprep.subr.bf16.mxu1 %v1185_v0 }
  0x62   :  { %1169 = vmatpush3.bf16.msra.mxu0 %v1428_v61 }
  0x64   :  { %1097 = vmatpush3.bf16.msra.mxu1 %v1096_v32 }
  0x65   :  { %1024 = vmatmul.mubr.f32.vlgmr.msra.gmra.mrb[0].mxu0 %v1437_v5 }
  0x67   :  { %919 = vmatmul.mubr.f32.vlgmr.msra.gmra.mrb[0].mxu1 %v1453_v11 }
  0x9e   :  { %v59_v38 = vpop.xlane.xlu0 %58 }
  0x9f   :  { %v60_v41 = vmul.f32 0.25, %v59_v38 }
  0xa1   :  { %v64_v51 = vrot.slane %v60_v41, %v33_v45 }
 0x138   :  { %v702_v46 = vpop.f32.mrb[0].mxu0 }
 0x139   :  { %v1025_v55 = vpop.f32.mrb[1].mxu0 }
 0x13a   :  { %v407_v56 = vpop.f32.mrb[0].mxu1 }
 0x13b   :  { %v1170_v59 = vadd.f32 %v407_v56, %v64_v51  ;;  %v920_v60 = vpop.f32.mrb[1].mxu1 }
 0x13d   :  { %v1171_v6 = vadd.f32 %v1170_v59, %v702_v46 }
 0x13f   :  { %v706_v61 = vmul.f32 -0.5, %v1171_v6 }
 0x141   :  { %708 = vst.msk [vmem:[%s1600_s4] sm:$0x3] %vm707_vm2, %v706_v61 }

</bundles_post_ra>
